<compile_context>
chip_gen: v5e
topology: v5e:2x2
jax: 0.10.0
libtpu: 0.0.40
codegen_flags: <defaults>
</compile_context>

<pallas_src>
import functools

import jax
import jax.numpy as jnp
from jax.experimental import pallas as pl
from jax.experimental.pallas import tpu as pltpu

BN_EPS = 1e-5
LEAKY_SLOPE = 0.2


def residual_kernel(act_ref, w_ref, out_ref, *, o_pad):
    # One MXU op: [h | gamma | beta] = [x | em | noise | 1 | 0pad] @ W_all  (biases folded in).
    full = jnp.dot(act_ref[...], w_ref[...], preferred_element_type=jnp.float32)

    # Static, lane-128-aligned splits (cheap vreg selection, no copies).
    h = full[:, :o_pad]
    gamma = full[:, o_pad:2 * o_pad]
    beta = full[:, 2 * o_pad:3 * o_pad]

    # BatchNorm1d (training mode, biased batch stats), two-pass for stability, fused with the
    # conditional affine.  Padded feature columns stay exactly 0 end-to-end.
    inv_b = 1.0 / h.shape[0]
    mean = jnp.sum(h, axis=0, keepdims=True) * inv_b
    hc = h - mean
    var = jnp.sum(hc * hc, axis=0, keepdims=True) * inv_b
    inv_std = jax.lax.rsqrt(var + BN_EPS)
    out = gamma * (hc * inv_std) + beta

    # LeakyReLU(0.2): max(out, 0.2*out) == out for out>0, 0.2*out otherwise.
    out_ref[...] = jnp.maximum(out, LEAKY_SLOPE * out).astype(out_ref.dtype)


def prepare_residual_params(params, *, mxu_dtype=jnp.float32):
    """Fold + pack the module's weights once per parameter update (trace-time XLA on tiny arrays).

    Returns the packed block-diagonal weight and static layout metadata used by residual_forward.
    """
    i = params["w1"].shape[0]
    o = params["w1"].shape[1]
    n_class = params["wfc"].shape[0]
    n_cond = n_class + 40                      # [em_lable, noise] contraction width
    o_pad = max(128, ((o + 127) // 128) * 128)  # lane-dense per-branch output width

    # ---- main branch fold:  h = x @ W_eff + b_eff  with  M = I + w2@w3 ----
    m = jnp.eye(o, dtype=jnp.float32) + params["w2"] @ params["w3"]
    w_eff = params["w1"] @ m                                                  # [I, O]
    b_eff = params["b1"] @ m + params["b2"] @ params["w3"] + params["b3"]     # [1, O]

    # ---- conditional branch fold:  gamma/beta = [em, noise] @ Wg/Wb + bg/bb ----
    wg = jnp.concatenate([params["wfc"] @ params["wg1"], params["wg2"]], axis=0)  # [n_cond, O]
    wb = jnp.concatenate([params["wfc"] @ params["wb1"], params["wb2"]], axis=0)  # [n_cond, O]
    bg_eff = params["bfc"] @ params["wg1"] + params["bg"]                          # [1, O]
    bb_eff = params["bfc"] @ params["wb1"] + params["bb"]                          # [1, O]

    # ---- pack into one block-diagonal [K_pad, 3*O_pad] weight (+ folded bias row) ----
    k = i + n_cond + 1                      # x | cond | ones-column (bias)
    k_pad = ((k + 15) // 16) * 16           # sublane-aligned for f32 (8) and bf16 (16)

    w_all = jnp.zeros((k_pad, 3 * o_pad), jnp.float32)
    w_all = w_all.at[:i, :o].set(w_eff)
    w_all = w_all.at[i:i + n_cond, o_pad:o_pad + o].set(wg)
    w_all = w_all.at[i:i + n_cond, 2 * o_pad:2 * o_pad + o].set(wb)
    w_all = w_all.at[i + n_cond, :o].set(b_eff[0])
    w_all = w_all.at[i + n_cond, o_pad:o_pad + o].set(bg_eff[0])
    w_all = w_all.at[i + n_cond, 2 * o_pad:2 * o_pad + o].set(bb_eff[0])
    w_all = w_all.astype(mxu_dtype)         # bf16 operands on v6e/v7x; accumulation stays f32

    return dict(w_all=w_all, i=i, o=o, o_pad=o_pad, n_cond=n_cond, k=k, k_pad=k_pad)


def residual_forward(x, em_lable, noise, prep):
    B = x.shape[0]
    o, o_pad, k, k_pad = prep["o"], prep["o_pad"], prep["k"], prep["k_pad"]
    dt = prep["w_all"].dtype

    # Single fused activation: [x | em | noise | 1], zero-padded to the aligned contraction width.
    ones = jnp.ones((B, 1), jnp.float32)
    act = jnp.concatenate([x, em_lable, noise, ones], axis=1)
    act = jnp.pad(act, ((0, 0), (0, k_pad - k))).astype(dt)

    vmem = pl.BlockSpec(memory_space=pltpu.MemorySpace.VMEM)
    out_pad = pl.pallas_call(
        functools.partial(residual_kernel, o_pad=o_pad),
        out_shape=jax.ShapeDtypeStruct((B, o_pad), jnp.float32),
        in_specs=[vmem, vmem],
        out_specs=vmem,
    )(act, prep["w_all"])

    # Consumers that can take the lane-dense padded output may skip this slice.
    return out_pad[:, :o]


def init_params(key, i, o, n_class):
    """Deterministic synthetic parameters matching the PyTorch module's shapes/init scheme."""
    def linear_init(k, fan_in, fan_out):
        kw, kb = jax.random.split(k)
        bound = 1.0 / (fan_in ** 0.5)
        w = jax.random.uniform(kw, (fan_in, fan_out), jnp.float32, -bound, bound)
        b = jax.random.uniform(kb, (1, fan_out), jnp.float32, -bound, bound)
        return w, b

    keys = jax.random.split(key, 5)
    w1, b1 = linear_init(keys[0], i, o)
    w2, b2 = linear_init(keys[1], o, o // 2)
    w3, b3 = linear_init(keys[2], o // 2, o)
    wfc, bfc = linear_init(keys[3], n_class, 20)

    # embed: Linear(60, 2*o). PyTorch weight is [2o, 60] with columns[:o]=1, columns[o:]=0.
    # Pre-transposed -> [60, 2o] with rows[:min(o,60)] = 1, remaining rows 0. Bias keeps default init.
    _, bemb = linear_init(keys[4], 60, 2 * o)
    wemb_t = jnp.zeros((60, 2 * o), jnp.float32).at[:min(o, 60), :].set(1.0)

    wg, wb = wemb_t[:, :o], wemb_t[:, o:]          # gamma / beta halves (chunk along out-features)
    return dict(
        w1=w1, b1=b1, w2=w2, b2=b2, w3=w3, b3=b3,
        wfc=wfc, bfc=bfc,
        wg1=wg[:20], wg2=wg[20:], bg=bemb[:, :o],  # fc-part / noise-part of the concat input
        wb1=wb[:20], wb2=wb[20:], bb=bemb[:, o:],
    )


def residual_reference(x, em_lable, noise, params):
    """Plain-JAX reference of the original (unfolded) PyTorch math, for the sanity check."""
    out1 = x @ params["w1"] + params["b1"]
    out2 = out1 @ params["w2"] + params["b2"]
    out3 = out2 @ params["w3"] + params["b3"]
    h = out1 + out3
    mean = h.mean(axis=0, keepdims=True)
    var = ((h - mean) ** 2).mean(axis=0, keepdims=True)
    h_bn = (h - mean) / jnp.sqrt(var + BN_EPS)
    con1 = em_lable @ params["wfc"] + params["bfc"]
    gamma = con1 @ params["wg1"] + noise @ params["wg2"] + params["bg"]
    beta = con1 @ params["wb1"] + noise @ params["wb2"] + params["bb"]
    out = gamma * h_bn + beta
    return jnp.where(out > 0, out, LEAKY_SLOPE * out)


if __name__ == "__main__":
    B, I, O, N_CLASS = 8, 16, 32, 4

    key = jax.random.PRNGKey(0)
    k_x, k_em, k_noise, k_params = jax.random.split(key, 4)

    x = jax.random.normal(k_x, (B, I), jnp.float32)
    em_lable = jax.random.normal(k_em, (B, N_CLASS), jnp.float32)
    # TODO(synk): PyTorch's Truncated_normal uses 4-candidate rejection sampling per element;
    # approximated here with jax.random.truncated_normal on (-2.5, 2.5), drawn once per forward.
    noise = jax.random.truncated_normal(k_noise, -2.5, 2.5, (B, 40), jnp.float32)

    params = init_params(k_params, I, O, N_CLASS)

    # ---- f32 MXU-operand path (reference-accuracy) ----
    prep = prepare_residual_params(params)                       # once per parameter update
    fwd = jax.jit(lambda a, b, c: residual_forward(a, b, c, prep))
    out = fwd(x, em_lable, noise)
    jax.block_until_ready(out)

    ref = residual_reference(x, em_lable, noise, params)
    assert out.shape == (B, O)
    assert jnp.allclose(out, ref, atol=2e-2, rtol=2e-2)

    # ---- bf16 MXU-operand path (recommended on v6e/v7x; f32 accumulation + f32 epilogue) ----
    prep_bf16 = prepare_residual_params(params, mxu_dtype=jnp.bfloat16)
    fwd_bf16 = jax.jit(lambda a, b, c: residual_forward(a, b, c, prep_bf16))
    out_bf16 = jax.block_until_ready(fwd_bf16(x, em_lable, noise))
    assert out_bf16.shape == (B, O)
    assert bool(jnp.all(jnp.isfinite(out_bf16)))
    assert float(jnp.max(jnp.abs(out_bf16 - ref))) < 0.5        # loose bound: bf16 operand rounding

    print("KERNEL_OK")
</pallas_src>

<mosaic_0001>
module attributes {stable_mosaic.version = 11 : i64} {
  func.func @residual_kernel(%arg0: memref<8x64xf32, #tpu.memory_space<vmem>>, %arg1: memref<64x384xf32, #tpu.memory_space<vmem>>, %arg2: memref<8x128xf32, #tpu.memory_space<vmem>>) attributes {dimension_semantics = [], scalar_prefetch = 0 : i64, scratch_operands = 0 : i64, tpu.core_type = #tpu.core_type<tc>} {
    %c0 = arith.constant 0 : index
    %c0_0 = arith.constant 0 : index
    %0 = vector.load %arg0[%c0, %c0_0] : memref<8x64xf32, #tpu.memory_space<vmem>>, vector<8x64xf32>
    %c0_1 = arith.constant 0 : index
    %c0_2 = arith.constant 0 : index
    %1 = vector.load %arg1[%c0_1, %c0_2] : memref<64x384xf32, #tpu.memory_space<vmem>>, vector<64x384xf32>
    %cst = arith.constant dense<0.000000e+00> : vector<8x384xf32>
    %2 = tpu.matmul %0, %1, %cst {dimension_numbers = #tpu.dot_dimension_numbers<[1], [0], [0], [1], [0, 0, 1, 1], [], []>} : vector<8x64xf32>, vector<64x384xf32>, vector<8x384xf32> -> vector<8x384xf32>
    %3 = vector.extract_strided_slice %2 {offsets = [0, 0], sizes = [8, 128], strides = [1, 1]} : vector<8x384xf32> to vector<8x128xf32>
    %4 = vector.extract_strided_slice %2 {offsets = [0, 128], sizes = [8, 128], strides = [1, 1]} : vector<8x384xf32> to vector<8x128xf32>
    %5 = vector.extract_strided_slice %2 {offsets = [0, 256], sizes = [8, 128], strides = [1, 1]} : vector<8x384xf32> to vector<8x128xf32>
    %cst_3 = arith.constant dense<0.000000e+00> : vector<128xf32>
    %6 = vector.multi_reduction <add>, %3, %cst_3 [0] : vector<8x128xf32> to vector<128xf32>
    %7 = vector.shape_cast %6 : vector<128xf32> to vector<1x128xf32>
    %cst_4 = arith.constant 1.250000e-01 : f32
    %8 = vector.broadcast %cst_4 : f32 to vector<1x128xf32>
    %9 = arith.mulf %7, %8 : vector<1x128xf32>
    %10 = vector.broadcast %9 : vector<1x128xf32> to vector<8x128xf32>
    %11 = arith.subf %3, %10 : vector<8x128xf32>
    %12 = arith.mulf %11, %11 : vector<8x128xf32>
    %cst_5 = arith.constant dense<0.000000e+00> : vector<128xf32>
    %13 = vector.multi_reduction <add>, %12, %cst_5 [0] : vector<8x128xf32> to vector<128xf32>
    %14 = vector.shape_cast %13 : vector<128xf32> to vector<1x128xf32>
    %cst_6 = arith.constant 1.250000e-01 : f32
    %15 = vector.broadcast %cst_6 : f32 to vector<1x128xf32>
    %16 = arith.mulf %14, %15 : vector<1x128xf32>
    %cst_7 = arith.constant 9.99999974E-6 : f32
    %17 = vector.broadcast %cst_7 : f32 to vector<1x128xf32>
    %18 = arith.addf %16, %17 : vector<1x128xf32>
    %19 = math.rsqrt %18 : vector<1x128xf32>
    %20 = vector.broadcast %19 : vector<1x128xf32> to vector<8x128xf32>
    %21 = arith.mulf %11, %20 : vector<8x128xf32>
    %22 = arith.mulf %4, %21 : vector<8x128xf32>
    %23 = arith.addf %22, %5 : vector<8x128xf32>
    %cst_8 = arith.constant 2.000000e-01 : f32
    %24 = vector.broadcast %cst_8 : f32 to vector<8x128xf32>
    %25 = arith.mulf %24, %23 : vector<8x128xf32>
    %26 = arith.maximumf %23, %25 : vector<8x128xf32>
    %c0_9 = arith.constant 0 : index
    %c0_10 = arith.constant 0 : index
    %27 = vector.load %arg2[%c0_9, %c0_10] : memref<8x128xf32, #tpu.memory_space<vmem>>, vector<8x128xf32>
    tpu.vector_store %arg2[%c0_9, %c0_10], %26 {strides = array<i32>} : memref<8x128xf32, #tpu.memory_space<vmem>>, vector<8x128xf32>,
    return
  }
}

</mosaic_0001>

<bundles_post_ra>
// kernel: _lambda_.1
= control target key start
LH: loop header
LB: loop body
LE: loop exit
PB: predicated region body
PF: predicated region fallthrough
CT: control target
= control target key end

     0   :  { %7 = vsyncpa [#allocation3], 0  ;;  %s256_s0 = inlined_call_operand.vmem [shape: f32[8,64], index: 0, kind: input, shape index: {}]   ;;  %s257_s1 = inlined_call_operand.hbm [shape: f32[64,384], index: 1, kind: input, shape index: {}]   ;;  %s258_s2 = inlined_call_operand.hbm [shape: f32[8,128], index: 2, kind: output, shape index: {}]  }
   0x1   :  { %8 = vsyncpa [#allocation4], 0  ;;  %s15_s11 = sshll.u32 %s257_s1, 4  ;;  %s228_s12 = smov [#allocation2]   ;;  %s16_s11 = int_to_ptr.hbm [resolvable:$true] %s15_s11 }
   0x2   :  { %s17_s13 = sshll.u32 %s228_s12, 4  ;;  %s229_s14 = smov 384   ;;  %s18_s13 = int_to_ptr.vmem [resolvable:$true] %s17_s13 }
   0x3   :  { %s230_s15 = smov 24  }
   0x4   :  { %23 = dma.hbm_to_vmem [thread:$0]  %s16_s11, 3072, %s18_s13, [#allocation3], %s229_s14, %s229_s14, %s230_s15  }
   0x5   :  { %224 = dma.done.wait [#allocation3], 3072  }
   0x6   :  { %225 = vsyncadd [#allocation3], 4294964224  ;;  %v50_v0 = vld [vmem:[#allocation2 + $0xa8] sm:$0xff]  ;;  %v47_v1 = vld [vmem:[#allocation2 + $0x90] sm:$0xff]  ;;  %vm53_vm0 = vcmask 523264   ;;  %s157_s20 = sshll.u32 %s258_s2, 4  ;;  %s158_s20 = int_to_ptr.hbm [resolvable:$true] %s157_s20 }
   0x7   :  { %65 = vmatpush.msra.mxu0 %v50_v0  ;;  %v44_v2 = vld [vmem:[#allocation2 + $0x78] sm:$0xff]  ;;  %v49_v4 = vld [vmem:[#allocation2 + $0xa0] sm:$0xff]  ;;  %v51_v5 = vld [vmem:[#allocation2 + $0xb0] sm:$0xff] }
   0x8   :  { %v52_v3 = vld [vmem:[#allocation2 + $0xb8] sm:$0xff]  ;;  %v41_v6 = vld [vmem:[#allocation2 + $0x60] sm:$0xff]  ;;  %85 = vmatpush.msra.mxu1 %v51_v5  ;;  %v46_v8 = vld [vmem:[#allocation2 + $0x88] sm:$0xff] }
   0x9   :  { %66 = vmatpush.msra.mxu0 %v47_v1  ;;  %105 = vmatpush.msra.mxu2 %v52_v3  ;;  %v48_v7 = vld [vmem:[#allocation2 + $0x98] sm:$0xff]  ;;  %v45_v9 = vld [vmem:[#allocation2 + $0x80] sm:$0xff]  ;;  %v38_v10 = vld [vmem:[#allocation2 + $0x48] sm:$0xff] }
   0xa   :  { %86 = vmatpush.msra.mxu1 %v48_v7  ;;  %v43_v11 = vld [vmem:[#allocation2 + $0x70] sm:$0xff]  ;;  %v42_v12 = vld [vmem:[#allocation2 + $0x68] sm:$0xff]  ;;  %v40_v14 = vld [vmem:[#allocation2 + $0x58] sm:$0xff] }
   0xb   :  { %67 = vmatpush.msra.mxu0 %v44_v2  ;;  %106 = vmatpush.msra.mxu2 %v49_v4  ;;  %v35_v13 = vld [vmem:[#allocation2 + $0x30] sm:$0xff]  ;;  %v32_v16 = vld [vmem:[#allocation2 + $0x18] sm:$0xff]  ;;  %v37_v17 = vld [vmem:[#allocation2 + $0x40] sm:$0xff] }
   0xc   :  { %87 = vmatpush.msra.mxu1 %v45_v9  ;;  %v39_v15 = vld [vmem:[#allocation2 + $0x50] sm:$0xff]  ;;  %v36_v18 = vld [vmem:[#allocation2 + $0x38] sm:$0xff]  ;;  %v29_v19 = vld [vmem:[#allocation2] sm:$0xff] }
   0xd   :  { %68 = vmatpush.msra.mxu0 %v41_v6  ;;  %107 = vmatpush.msra.mxu2 %v46_v8  ;;  %v28_v20 = vld [vmem:[%s256_s0] sm:$0xff]  ;;  %v34_v21 = vld [vmem:[#allocation2 + $0x28] sm:$0xff]  ;;  %v31_v23 = vld [vmem:[#allocation2 + $0x10] sm:$0xff]  ;;  %s231_s0 = smov [#allocation5]  }
   0xe   :  { %88 = vmatpush.msra.mxu1 %v42_v12  ;;  %v33_v22 = vld [vmem:[#allocation2 + $0x20] sm:$0xff]  ;;  %v30_v24 = vld [vmem:[#allocation2 + $0x8] sm:$0xff]  ;;  %s155_s17 = sshll.u32 %s231_s0, 4  ;;  %s156_s17 = int_to_ptr.vmem [resolvable:$true] %s155_s17 }
   0xf   :  { %69 = vmatpush.msra.mxu0 %v38_v10  ;;  %108 = vmatpush.msra.mxu2 %v43_v11 }
  0x10   :  { %89 = vmatpush.msra.mxu1 %v39_v15 }
  0x11   :  { %70 = vmatpush.msra.mxu0 %v35_v13  ;;  %109 = vmatpush.msra.mxu2 %v40_v14 }
  0x12   :  { %90 = vmatpush.msra.mxu1 %v36_v18 }
  0x13   :  { %71 = vmatpush.msra.mxu0 %v32_v16  ;;  %110 = vmatpush.msra.mxu2 %v37_v17 }
  0x14   :  { %91 = vmatpush.msra.mxu1 %v33_v22 }
  0x15   :  { %72 = vmatpush.msra.mxu0 %v29_v19  ;;  %111 = vmatpush.msra.mxu2 %v34_v21 }
  0x16   :  { %167 = vmatmul.msk.f32.vlgmr.msra.gmra.mxu0 %vm53_vm0, %v28_v20  ;;  %92 = vmatpush.msra.mxu1 %v30_v24 }
  0x17   :  { %112 = vmatpush.msra.mxu2 %v31_v23  ;;  %168 = vmatmul.msk.f32.vlgmr.msra.gmra.mxu1 %vm53_vm0, %v28_v20 }
  0x18   :  { %169 = vmatmul.msk.f32.vlgmr.msra.gmra.mxu2 %vm53_vm0, %v28_v20 }
  0x93   :  { %v74_v25 = vpop.f32.mrf.mxu0 }
  0x94   :  { %v117_v26 = vrot.slane %v74_v25, 4  ;;  %v94_v49 = vpop.f32.mrf.mxu1 }
  0x96   :  { %v118_v27 = vadd.f32 %v117_v26, %v74_v25 }
  0x98   :  { %v119_v28 = vrot.slane %v118_v27, 2 }
  0x9a   :  { %v120_v29 = vadd.f32 %v119_v28, %v118_v27 }
  0x9b   :  { %v114_v52 = vpop.f32.mrf.mxu2 }
  0x9c   :  { %v121_v30 = vrot.slane %v120_v29, 1 }
  0x9e   :  { %v122_v31 = vadd.f32 %v121_v30, %v120_v29 }
  0xa0   :  { %v123_v32 = vmul.f32 0.125, %v122_v31 }
  0xa2   :  { %v124_v33 = vsub.f32 %v74_v25, %v123_v32 }
  0xa4   :  { %v125_v34 = vmul.f32 %v124_v33, %v124_v33 }
  0xa6   :  { %v126_v35 = vrot.slane %v125_v34, 4 }
  0xa8   :  { %v127_v36 = vadd.f32 %v126_v35, %v125_v34 }
  0xaa   :  { %v128_v37 = vrot.slane %v127_v36, 2 }
  0xac   :  { %v129_v38 = vadd.f32 %v128_v37, %v127_v36 }
  0xae   :  { %v130_v39 = vrot.slane %v129_v38, 1 }
  0xb0   :  { %v131_v40 = vadd.f32 %v130_v39, %v129_v38 }
  0xb2   :  { %v132_v41 = vmul.f32 0.125, %v131_v40 }
  0xb4   :  { %v133_v42 = vadd.f32 1e-05, %v132_v41 }
  0xb6   :  { %174 = vrsqrt.f32 %v133_v42  ;;  %vm140_vm2 = vweird.f32 %v133_v42 }
  0xbc   :  { %v175_v43 = vpop.eup %174 }
  0xbd   :  { %v135_v44 = vmul.f32 %v175_v43, %v133_v42  ;;  %vm141_vm1 = vweird.f32 %v175_v43 }
  0xbe   :  { %vm142_vm3 = vmor %vm140_vm2, %vm141_vm1 }
  0xbf   :  { %v136_v45 = vmul.f32 %v175_v43, %v135_v44 }
  0xc1   :  { %v137_v46 = vmul.f32 0.5, %v136_v45 }
  0xc3   :  { %v138_v47 = vsub.f32 1.5, %v137_v46 }
  0xc5   :  { %v139_v48 = vmul.f32 %v175_v43, %v138_v47 }
  0xc7   :  { %v143_v50 = vsel %vm142_vm3, %v175_v43, %v139_v48 }
  0xc8   :  { %v144_v51 = vmul.f32 %v143_v50, %v124_v33 }
  0xca   :  { %v145_v53 = vmul.f32 %v144_v51, %v94_v49 }
  0xcc   :  { %v146_v54 = vadd.f32 %v145_v53, %v114_v52 }
  0xce   :  { %v147_v55 = vmul.f32 0.2, %v146_v54 }
  0xd0   :  { %v148_v56 = vmax.f32 %v146_v54, %v147_v55 }
  0xd2   :  { %149 = vst [vmem:[#allocation5] sm:$0xff] %v148_v56 }
  0xd3   :  { %160 = dma.vmem_to_hbm [thread:$0]  %s156_s17, 128, %s158_s20, [#allocation4]  }
  0xd4   :  { %226 = dma.done.wait [#allocation4], 128  }
  0xd5   :  { %227 = vsyncadd [#allocation4], 4294967168 }
  0xd6   :  { %165 = vsyncpa [#allocation3], 1 }
  0xd7   :  { %166 = vsyncpa [#allocation4], 1 }

</bundles_post_ra>
